<compile_context>
chip_gen: v7x
topology: tpu7x:2x2x1
jax: 0.10.0
libtpu: 0.0.40
codegen_flags: <defaults>
</compile_context>

<pallas_src>
import functools

import numpy as np

import jax
import jax.numpy as jnp
from jax.experimental import pallas as pl
from jax.experimental.pallas import tpu as pltpu

_LANES = 128                    # vreg lane width (last-dim tile unit)
_SUBLANES = 8                   # f32 sublane count (second-to-last tile unit)
_MIB = 1024 * 1024
_MIN_SPLIT_BYTES = 512 * 1024   # split single-block arrays >= this so v7x's
                                # second TensorCore also gets grid iterations
_DEFAULT_MIN_PALLAS_ELEMS = 64 * 1024   # below this, fused XLA elementwise wins


@functools.lru_cache(maxsize=None)
def _target_block_bytes():
    """Per-buffer block size; in+out double-buffered => ~4x this in VMEM.

    v6e/v7x: 32 MiB default scoped VMEM -> 4 MiB blocks (16 MiB total).
    v5e (and unknown/older): 16 MiB scoped VMEM -> 2 MiB blocks (8 MiB total).
    """
    try:
        kind = jax.devices()[0].device_kind.lower()
    except Exception:
        return 2 * _MIB
    if ("v6" in kind) or ("v7" in kind) or ("7x" in kind):
        return 4 * _MIB
    return 2 * _MIB


def _round_up(x, m):
    return ((x + m - 1) // m) * m


def _elementwise_kernel(func, x_ref, o_ref):
    # Whole-tile load -> user func on the VPU -> whole-tile store.
    o_ref[...] = func(x_ref[...]).astype(o_ref.dtype)


class Lambda:
    """JAX/Pallas port of the PyTorch ``Lambda`` module.

    :param func: called during forward.  For the Pallas fast path it must be a
        jnp-traceable *elementwise* function: anything with axis semantics
        (softmax, reductions over the tensor, reshape-sensitive ops) would be
        applied to a flattened [rows, 128] view and produce wrong results, so
        shape-changing funcs are auto-detected and fall back to plain JAX.
    :param min_pallas_elems: single-array inputs with fewer elements than this
        are handled by plain ``func(x)`` -- a standalone pallas_call is a
        custom-call (fusion) boundary plus launch overhead, so it only pays
        off for large arrays.
    """

    def __init__(self, func, min_pallas_elems=_DEFAULT_MIN_PALLAS_ELEMS):
        self.func = func
        self.min_pallas_elems = min_pallas_elems
        self._compiled = {}   # (rows, row_tile, in_dtype, out_dtype) -> jitted fn

    def __call__(self, *args, **kwargs):
        return self.forward(*args, **kwargs)

    # -- helpers --------------------------------------------------------------

    @staticmethod
    def _supported_dtype(dtype):
        dt = np.dtype(dtype)
        return dt != np.dtype(np.bool_) and dt.itemsize in (1, 2, 4)

    def _row_tile(self, rows, in_dtype, out_dtype):
        in_is = np.dtype(in_dtype).itemsize
        out_is = np.dtype(out_dtype).itemsize
        max_is = max(in_is, out_is)
        # Packed sublane multiple of the narrower dtype (8 f32 / 16 bf16 / 32 i8).
        sublane = max(_SUBLANES, 32 // min(in_is, out_is))
        # Biggest block that keeps in+out double buffers inside scoped VMEM.
        tile_cap = (_target_block_bytes() // (_LANES * max_is)) // sublane * sublane
        if rows > tile_cap:
            return tile_cap
        # Single-block case: split mid-size arrays into >=2 grid steps so both
        # v7x TensorCores get work (negligible cost on 1-TC chips).
        if rows * _LANES * max_is >= _MIN_SPLIT_BYTES and rows >= 2 * sublane:
            return min(tile_cap, _round_up(pl.cdiv(rows, 2), sublane))
        # Whole array in one block; block_shape == full dims is always legal.
        return rows

    def _pallas_fn(self, rows, row_tile, in_dtype, out_dtype):
        key = (rows, row_tile, str(in_dtype), str(out_dtype))
        fn = self._compiled.get(key)
        if fn is None:
            n = rows * _LANES
            nbytes = n * (np.dtype(in_dtype).itemsize + np.dtype(out_dtype).itemsize)
            fn = jax.jit(pl.pallas_call(
                functools.partial(_elementwise_kernel, self.func),
                out_shape=jax.ShapeDtypeStruct((rows, _LANES), out_dtype),
                grid=(pl.cdiv(rows, row_tile),),
                in_specs=[pl.BlockSpec((row_tile, _LANES), lambda i: (i, 0))],
                out_specs=pl.BlockSpec((row_tile, _LANES), lambda i: (i, 0)),
                compiler_params=pltpu.CompilerParams(
                    dimension_semantics=("parallel",)),
                cost_estimate=pl.CostEstimate(
                    flops=n, transcendentals=0, bytes_accessed=nbytes),
            ))
            self._compiled[key] = fn
        return fn

    # -- forward --------------------------------------------------------------

    def forward(self, *args, **kwargs):
        # Pallas fast path only for the single-array, large, 128-aligned case;
        # everything else keeps the original semantics: just call func.
        if kwargs or len(args) != 1 or not (
                hasattr(args[0], "shape") and hasattr(args[0], "dtype")):
            return self.func(*args, **kwargs)
        x = args[0]

        n = int(np.prod(x.shape)) if x.shape else 1
        # TODO(synk): large non-128-aligned arrays also take the plain-jnp path;
        # a 1-D BlockSpec with cdiv partial-block handling could cover them too.
        if (n < self.min_pallas_elems or n % _LANES != 0
                or not self._supported_dtype(x.dtype)):
            return self.func(x)

        # Trace func's output spec so the Pallas path matches plain func(x)
        # exactly (dtype-changing funcs) and non-shape-preserving funcs
        # (reductions, reshapes, ...) safely fall back.
        try:
            out_aval = jax.eval_shape(
                self.func, jax.ShapeDtypeStruct(x.shape, x.dtype))
        except Exception:
            return self.func(x)
        if out_aval.shape != x.shape or not self._supported_dtype(out_aval.dtype):
            return self.func(x)

        rows = n // _LANES
        row_tile = self._row_tile(rows, x.dtype, out_aval.dtype)
        fn = self._pallas_fn(rows, row_tile, x.dtype, out_aval.dtype)

        # Lane-dense [rows, 128] slab: since n is a multiple of 128 this is a
        # free reshape for contiguous inputs (no pad, no copy).
        slab = x.reshape(rows, _LANES)
        return fn(slab).reshape(out_aval.shape)


if __name__ == "__main__":
    key = jax.random.PRNGKey(0)

    # Example func (the same kind of lambda the PyTorch module is handed):
    func = lambda t: jax.nn.relu(t) * 2.0 + 1.0

    # 1) Small NCHW input consistent with typical Lambda usage; force the
    #    Pallas path (default threshold would correctly prefer plain jnp here).
    module_small = Lambda(func, min_pallas_elems=0)
    x = jax.random.normal(key, (2, 4, 16, 16), dtype=jnp.float32)     # 2048 elems
    out = jax.block_until_ready(module_small(x))
    ref = func(x)
    assert out.shape == ref.shape and out.dtype == ref.dtype
    assert jnp.allclose(out, ref, atol=1e-6, rtol=1e-6)

    # 2) Larger input with the default module: multi-block grid (>=2 steps so
    #    both v7x TensorCores are used).
    module = Lambda(func)
    x2 = jax.random.normal(jax.random.PRNGKey(1), (2, 4, 128, 128), dtype=jnp.float32)
    out2 = jax.block_until_ready(module(x2))
    ref2 = func(x2)
    assert out2.shape == ref2.shape and out2.dtype == ref2.dtype
    assert jnp.allclose(out2, ref2, atol=1e-6, rtol=1e-6)

    # 3) Non-128-aligned shape: plain-jnp fallback (no pad/slice HBM passes).
    x3 = jax.random.normal(jax.random.PRNGKey(2), (3, 5, 7, 11), dtype=jnp.float32)
    out3 = jax.block_until_ready(module(x3))
    assert jnp.allclose(out3, func(x3), atol=1e-6, rtol=1e-6)

    # 4) bf16 exercises the dtype-aware (16-row packed sublane) tiling.
    x4 = jax.random.normal(jax.random.PRNGKey(3), (2, 4, 16, 16), dtype=jnp.bfloat16)
    out4 = jax.block_until_ready(module_small(x4))
    ref4 = func(x4)
    assert out4.shape == ref4.shape and out4.dtype == ref4.dtype
    assert jnp.allclose(out4.astype(jnp.float32), ref4.astype(jnp.float32),
                        atol=1e-2, rtol=1e-2)

    print("KERNEL_OK")
</pallas_src>

<mosaic_0001>
module attributes {stable_mosaic.version = 11 : i64} {
  func.func @_elementwise_kernel(%arg0: i32, %arg1: memref<16x128xf32, #tpu.memory_space<vmem>>, %arg2: memref<16x128xf32, #tpu.memory_space<vmem>>) attributes {dimension_semantics = [#tpu.dimension_semantics<parallel>], iteration_bounds = array<i64: 1>, scalar_prefetch = 0 : i64, scratch_operands = 0 : i64, tpu.core_type = #tpu.core_type<tc>, window_params = [{transform_indices = @transform_0, window_bounds = array<i64: 16, 128>}, {transform_indices = @transform_1, window_bounds = array<i64: 16, 128>}]} {
    %c0 = arith.constant 0 : index
    %c0_0 = arith.constant 0 : index
    %0 = vector.load %arg1[%c0, %c0_0] : memref<16x128xf32, #tpu.memory_space<vmem>>, vector<16x128xf32>
    %cst = arith.constant 0.000000e+00 : f32
    %1 = vector.broadcast %cst : f32 to vector<16x128xf32>
    %2 = arith.maximumf %0, %1 : vector<16x128xf32>
    %cst_1 = arith.constant 2.000000e+00 : f32
    %3 = vector.broadcast %cst_1 : f32 to vector<16x128xf32>
    %4 = arith.mulf %2, %3 : vector<16x128xf32>
    %cst_2 = arith.constant 1.000000e+00 : f32
    %5 = vector.broadcast %cst_2 : f32 to vector<16x128xf32>
    %6 = arith.addf %4, %5 : vector<16x128xf32>
    %c0_3 = arith.constant 0 : index
    %c0_4 = arith.constant 0 : index
    %7 = vector.load %arg2[%c0_3, %c0_4] : memref<16x128xf32, #tpu.memory_space<vmem>>, vector<16x128xf32>
    tpu.vector_store %arg2[%c0_3, %c0_4], %6 {strides = array<i32>} : memref<16x128xf32, #tpu.memory_space<vmem>>, vector<16x128xf32>,
    return
  }
  func.func @transform_0(%arg0: i32) -> (i32, i32) {
    %c0_i32 = arith.constant 0 : i32
    %c0_i32_0 = arith.constant 0 : i32
    return %arg0, %c0_i32 : i32, i32
  }
  func.func @transform_1(%arg0: i32) -> (i32, i32) {
    %c0_i32 = arith.constant 0 : i32
    %c0_i32_0 = arith.constant 0 : i32
    return %arg0, %c0_i32 : i32, i32
  }
}

</mosaic_0001>

<bundles_post_ra>
// kernel: tpu_custom_call.1
= control target key start
LH: loop header
LB: loop body
LE: loop exit
PB: predicated region body
PF: predicated region fallthrough
CT: control target
= control target key end

     0   :  { %6 = vsyncpa [#allocation3], 0  ;;  %s146_s0 = inlined_call_operand.hbm [shape: f32[16,128], index: 0, kind: input, shape index: {}]   ;;  %s147_s1 = inlined_call_operand.hbm [shape: f32[16,128], index: 1, kind: output, shape index: {}]  }
   0x1   :  { %7 = vsyncpa [#allocation4], 0  ;;  %s102_s6 = smov [#allocation2]   ;;  %s54_s10 = scalar_lea.hbm %s146_s0, 256 }
   0x2   :  { %s13_s7 = sshll.u32 %s102_s6, 4  ;;  %p55_p0 = scmp.ne.s32.totalorder %s146_s0, %s54_s10  ;;  %s14_s7 = int_to_ptr.vmem [resolvable:$true] %s13_s7 }
   0x3   :  { %p58_p1 = scmp.lt.u32.totalorder %s54_s10, %s146_s0 }
   0x5   :  { %p60_p2 = pnand %p58_p1, %p55_p0 }
   0x7   :  { %63 = shalt.err (!%p60_p2)
}
   0x8   :  { %s64_s15 = scalar_lea.vmem %s14_s7, 256  ;;  %p69_p4 = scmp.lt.s32.totalorder %s14_s7, %s14_s7 }
   0x9   :  { %p65_p3 = scmp.ne.s32.totalorder %s14_s7, %s64_s15  ;;  %p70_p5 = scmp.lt.s32.totalorder %s64_s15, %s64_s15 }
   0xb   :  { %p71_p6 = por %p70_p5, %p69_p4 }
   0xd   :  { %p72_p7 = pnand %p71_p6, %p65_p3 }
   0xf   :  { %75 = shalt.err (!%p72_p7)
}
  0x10   :  { %s103_s16 = smov 128   ;;  %s104_s17 = smov 8  }
  0x11   :  { %19 = dma.hbm_to_vmem [thread:$0]  %s146_s0, 256, %s14_s7, [#allocation3], %s103_s16, %s103_s16, %s104_s17  }
  0x12   :  { %98 = dma.done.wait [#allocation3], 256  }
  0x13   :  { %99 = vsyncadd [#allocation3], 4294967040  ;;  %v23_v0 = vld [vmem:[#allocation2] sm:$0xff]  ;;  %v24_v1 = vld [vmem:[#allocation2 + $0x8] sm:$0xff]  ;;  %s105_s20 = smov [#allocation5]  }
  0x14   :  { %v25_v2 = vmax.f32 %v23_v0, 0.0  ;;  %v26_v3 = vmax.f32 %v24_v1, 0.0  ;;  %s38_s21 = sshll.u32 %s105_s20, 4  ;;  %s39_s21 = int_to_ptr.vmem [resolvable:$true] %s38_s21 }
  0x15   :  { %s76_s22 = scalar_lea.vmem %s39_s21, 256  ;;  %p81_p9 = scmp.lt.s32.totalorder %s39_s21, %s39_s21 }
  0x16   :  { %v27_v4 = vmul.f32 2.0, %v25_v2  ;;  %v28_v5 = vmul.f32 2.0, %v26_v3  ;;  %p77_p8 = scmp.ne.s32.totalorder %s39_s21, %s76_s22  ;;  %p82_p10 = scmp.lt.s32.totalorder %s76_s22, %s76_s22 }
  0x18   :  { %v29_v6 = vadd.f32 1.0, %v27_v4  ;;  %v30_v7 = vadd.f32 1.0, %v28_v5  ;;  %p83_p11 = por %p82_p10, %p81_p9 }
  0x1a   :  { %31 = vst [vmem:[#allocation5] sm:$0xff] %v29_v6  ;;  %32 = vst [vmem:[#allocation5 + $0x8] sm:$0xff] %v30_v7  ;;  %p84_p12 = pnand %p83_p11, %p77_p8 }
  0x1c   :  { %87 = shalt.err (!%p84_p12)
}
  0x1d   :  { %s88_s24 = scalar_lea.hbm %s147_s1, 256 }
  0x1e   :  { %p89_p13 = scmp.ne.s32.totalorder %s147_s1, %s88_s24  ;;  %p92_p0 = scmp.lt.u32.totalorder %s88_s24, %s147_s1 }
  0x20   :  { %p94_p1 = pnand %p92_p0, %p89_p13 }
  0x22   :  { %97 = shalt.err (!%p94_p1)
}
  0x23   :  { %44 = dma.vmem_to_hbm [thread:$0]  %s39_s21, 256, %s147_s1, [#allocation4], %s103_s16, %s103_s16, %s104_s17  }
  0x24   :  { %100 = dma.done.wait [#allocation4], 256  }
  0x25   :  { %101 = vsyncadd [#allocation4], 4294967040 }
  0x26   :  { %48 = vsyncpa [#allocation3], 1 }
  0x27   :  { %49 = vsyncpa [#allocation4], 1 }

</bundles_post_ra>
